<compile_context>
chip_gen: v7x
topology: tpu7x:2x2x1
jax: 0.10.0
libtpu: 0.0.40
codegen_flags: <defaults>
</compile_context>

<pallas_src>
import math
import functools

import jax
import jax.numpy as jnp
from jax import lax
from jax.experimental import pallas as pl
from jax.experimental.pallas import tpu as pltpu

_VMEM_LIMIT = 64 * 1024 * 1024  # fits every generation's physical VMEM


def _pick_tile(n, cap, align=16):
    """Largest tile t <= cap with n % t == 0, preferring t % align == 0."""
    if n <= cap:
        return n
    any_div = 0
    for t in range(cap, 0, -1):
        if n % t == 0:
            if t % align == 0:
                return t
            if any_div == 0:
                any_div = t
    return any_div or n


def _default_probs_dtype():
    """bf16 exp on v6e/v7x (EUP-bound for small d_k); f32 on v5e (no bf16 EUP)."""
    try:
        kind = jax.devices()[0].device_kind.lower()
    except Exception:
        return jnp.float32
    if "v5 lite" in kind or "v5e" in kind or "v5lite" in kind:
        return jnp.float32
    return jnp.bfloat16


# --------------------------------------------------------------------------
# Kernel 1: fused Q/K/V projections; emits head-major (H, tr, d_k) blocks so
# no XLA transpose is needed between the kernels.
# --------------------------------------------------------------------------
def qkv_proj_kernel(q_ref, k_ref, v_ref,
                    wq_ref, wk_ref, wv_ref,
                    bq_ref, bk_ref, bv_ref,
                    qo_ref, ko_ref, vo_ref, *, scale, num_heads, d_k):
    cdt = wq_ref.dtype                      # MXU compute dtype (bf16 by default)
    q = q_ref[...].astype(cdt)
    k = k_ref[...].astype(cdt)
    v = v_ref[...].astype(cdt)

    # bf16 MXU operands, f32 accumulation; bias add stays f32 on the VPU.
    Q = jnp.dot(q, wq_ref[...], preferred_element_type=jnp.float32) + bq_ref[...]
    K = jnp.dot(k, wk_ref[...], preferred_element_type=jnp.float32) + bk_ref[...]
    V = jnp.dot(v, wv_ref[...], preferred_element_type=jnp.float32) + bv_ref[...]

    # Fold 1/sqrt(d_k) into Q so the (S, S) score tiles never need scaling.
    Qc = (Q * scale).astype(qo_ref.dtype)
    Kc = K.astype(ko_ref.dtype)
    Vc = V.astype(vo_ref.dtype)

    # Head-major writeback (tr, D) -> (H, tr, d_k) via static lane slices; the
    # relayout work hides under the MXU matmuls (this kernel is HBM-bound) and
    # removes the inter-kernel HBM round trip of Q/K/V entirely.
    for h in range(num_heads):
        sl = slice(h * d_k, (h + 1) * d_k)
        qo_ref[h] = Qc[:, sl]
        ko_ref[h] = Kc[:, sl]
        vo_ref[h] = Vc[:, sl]


# --------------------------------------------------------------------------
# Kernel 2: flash attention (online softmax) + fused output projection
#   q_ref/k_ref/v_ref: (H, t, d_k) head-batched tiles (batch dim squeezed)
#   wo_ref:            (D, D) output-projection weight (resident)
#   o_ref:             (tq, D) lane-dense output tile
# --------------------------------------------------------------------------
def flash_mha_kernel(q_ref, k_ref, v_ref, wo_ref, bo_ref, o_ref,
                     m_scr, l_scr, acc_scr, *, probs_dtype, num_heads, d_k):
    ki = pl.program_id(2)

    @pl.when(ki == 0)
    def _init():
        m_scr[...] = jnp.full(m_scr.shape, -jnp.inf, dtype=m_scr.dtype)
        l_scr[...] = jnp.zeros(l_scr.shape, dtype=l_scr.dtype)
        acc_scr[...] = jnp.zeros(acc_scr.shape, dtype=acc_scr.dtype)

    q = q_ref[...]                          # (H, tq, d_k), pre-scaled, bf16
    k = k_ref[...]                          # (H, tk, d_k), bf16
    v = v_ref[...]                          # (H, tk, d_k), bf16

    # scores = Q K^T batched over heads; NT dot_general, no explicit transpose.
    s = lax.dot_general(q, k, (((2,), (2,)), ((0,), (0,))),
                        preferred_element_type=jnp.float32)      # (H, tq, tk)

    m_prev = m_scr[...]
    m_new = jnp.maximum(m_prev, jnp.max(s, axis=-1, keepdims=True))
    alpha = jnp.exp(m_prev - m_new)                               # (H, tq, 1) f32
    # exp in bf16 on v6e/v7x (EUP is the binding slot for small d_k); f32 on v5e.
    p = jnp.exp((s - m_new).astype(probs_dtype))                  # (H, tq, tk)

    # Running sum kept in f32 regardless of the probs dtype.
    l_scr[...] = alpha * l_scr[...] + jnp.sum(
        p, axis=-1, keepdims=True, dtype=jnp.float32)
    pv = lax.dot_general(p.astype(v.dtype), v, (((2,), (1,)), ((0,), (0,))),
                         preferred_element_type=jnp.float32)      # (H, tq, d_k)
    acc_scr[...] = alpha * acc_scr[...] + pv
    m_scr[...] = m_new

    @pl.when(ki == pl.num_programs(2) - 1)
    def _finalize():
        inv_l = pl.reciprocal(l_scr[...], approx=True)            # EUP slot
        attn = (acc_scr[...] * inv_l).astype(wo_ref.dtype)        # (H, tq, d_k)
        # Re-merge heads along lanes (no major/sublane transpose), then one
        # full-depth (tq, D) @ (D, D) MXU matmul for the output projection.
        attn2d = jnp.concatenate(
            [attn[h] for h in range(num_heads)], axis=-1)         # (tq, D)
        out = jnp.dot(attn2d, wo_ref[...], preferred_element_type=jnp.float32)
        o_ref[...] = (out + bo_ref[...]).astype(o_ref.dtype)


# --------------------------------------------------------------------------
# Wrapper
# --------------------------------------------------------------------------
def multi_head_attention(q, k, v, params, num_heads, *,
                         compute_dtype=jnp.bfloat16,
                         probs_dtype=None,
                         out_dtype=None,
                         row_tile=512, q_tile=512, kv_tile=512):
    """q, k, v: [B, S, D] float32.  params: dict of pre-transposed weights/biases."""
    B, S, D = q.shape
    assert D % num_heads == 0
    H = num_heads
    d_k = D // H
    scale = 1.0 / math.sqrt(d_k)
    cdt = compute_dtype
    if probs_dtype is None:
        probs_dtype = _default_probs_dtype()
    if out_dtype is None:
        out_dtype = q.dtype

    # ----- Kernel 1: fused Q/K/V projections, head-major output -----
    tr = _pick_tile(S, row_tile, align=16)

    x_spec = pl.BlockSpec((None, tr, D), lambda b, i: (b, i, 0))
    w_spec = pl.BlockSpec((D, D), lambda b, i: (0, 0))      # constant index map
    b_spec = pl.BlockSpec((1, D), lambda b, i: (0, 0))
    head_spec = pl.BlockSpec((None, H, tr, d_k), lambda b, i: (b, 0, i, 0))

    qh, kh, vh = pl.pallas_call(
        functools.partial(qkv_proj_kernel, scale=scale, num_heads=H, d_k=d_k),
        out_shape=tuple(jax.ShapeDtypeStruct((B, H, S, d_k), cdt) for _ in range(3)),
        grid=(B, S // tr),
        in_specs=[x_spec, x_spec, x_spec,
                  w_spec, w_spec, w_spec,
                  b_spec, b_spec, b_spec],
        out_specs=(head_spec, head_spec, head_spec),
        compiler_params=pltpu.CompilerParams(
            dimension_semantics=("parallel", "parallel"),
            vmem_limit_bytes=_VMEM_LIMIT),
    )(q, k, v,
      params["wq"].astype(cdt), params["wk"].astype(cdt), params["wv"].astype(cdt),
      params["bq"], params["bk"], params["bv"])

    # ----- Kernel 2: flash attention + fused output projection -----
    tq = _pick_tile(S, q_tile, align=16)
    # v7x megacore: make sure the parallel axes carry >= 2 programs.
    if B * (S // tq) < 2 and tq % 2 == 0 and (tq // 2) % 8 == 0:
        tq //= 2
    tk = _pick_tile(S, kv_tile, align=128)

    qh_spec = pl.BlockSpec((None, H, tq, d_k), lambda b, i, j: (b, 0, i, 0))
    kv_spec = pl.BlockSpec((None, H, tk, d_k), lambda b, i, j: (b, 0, j, 0))
    wo_spec = pl.BlockSpec((D, D), lambda b, i, j: (0, 0))  # constant index map
    bo_spec = pl.BlockSpec((1, D), lambda b, i, j: (0, 0))
    out_spec = pl.BlockSpec((None, tq, D), lambda b, i, j: (b, i, 0))

    out = pl.pallas_call(
        functools.partial(flash_mha_kernel, probs_dtype=probs_dtype,
                          num_heads=H, d_k=d_k),
        out_shape=jax.ShapeDtypeStruct((B, S, D), out_dtype),
        grid=(B, S // tq, S // tk),
        in_specs=[qh_spec, kv_spec, kv_spec, wo_spec, bo_spec],
        out_specs=out_spec,
        scratch_shapes=[
            pltpu.VMEM((H, tq, 1), jnp.float32),    # running max
            pltpu.VMEM((H, tq, 1), jnp.float32),    # running sum
            pltpu.VMEM((H, tq, d_k), jnp.float32),  # output accumulator
        ],
        compiler_params=pltpu.CompilerParams(
            dimension_semantics=("parallel", "parallel", "arbitrary"),
            vmem_limit_bytes=_VMEM_LIMIT),
    )(qh, kh, vh, params["wo"].astype(cdt), params["bo"])
    return out


def init_params(key, d_model):
    """Deterministic init mimicking nn.Linear default (uniform +/- 1/sqrt(fan_in)).
    Weights are stored already transposed: [D_in, D_out]."""
    bound = 1.0 / math.sqrt(d_model)
    keys = jax.random.split(key, 8)
    u = lambda kk, shape: jax.random.uniform(kk, shape, jnp.float32, -bound, bound)
    return {
        "wq": u(keys[0], (d_model, d_model)), "bq": u(keys[1], (1, d_model)),
        "wk": u(keys[2], (d_model, d_model)), "bk": u(keys[3], (1, d_model)),
        "wv": u(keys[4], (d_model, d_model)), "bv": u(keys[5], (1, d_model)),
        "wo": u(keys[6], (d_model, d_model)), "bo": u(keys[7], (1, d_model)),
    }


def mha_reference(q, k, v, params, num_heads):
    """Pure-JAX f32 reference replicating the PyTorch forward (eval, mask=None)."""
    B, S, D = q.shape
    d_k = D // num_heads

    def proj(x, w, b):
        return x @ w + b  # w already [D_in, D_out]

    def split_heads(x):  # [B, S, D] -> [B, H, S, d_k]
        return x.reshape(B, S, num_heads, d_k).transpose(0, 2, 1, 3)

    Q = split_heads(proj(q, params["wq"], params["bq"]))
    K = split_heads(proj(k, params["wk"], params["bk"]))
    V = split_heads(proj(v, params["wv"], params["bv"]))

    scores = jnp.einsum("bhqd,bhkd->bhqk", Q, K) / math.sqrt(d_k)
    attn = jax.nn.softmax(scores, axis=-1)
    out = jnp.einsum("bhqk,bhkd->bhqd", attn, V)
    out = out.transpose(0, 2, 1, 3).reshape(B, S, D)
    return out @ params["wo"] + params["bo"]


if __name__ == "__main__":
    B, S, d_model, num_heads = 2, 8, 32, 4

    key = jax.random.PRNGKey(0)
    kq, kk, kv_, kp = jax.random.split(key, 4)
    q = jax.random.normal(kq, (B, S, d_model), jnp.float32)
    k = jax.random.normal(kk, (B, S, d_model), jnp.float32)
    v = jax.random.normal(kv_, (B, S, d_model), jnp.float32)

    params = init_params(kp, d_model)

    out = multi_head_attention(q, k, v, params, num_heads)
    out = jax.block_until_ready(out)

    ref = mha_reference(q, k, v, params, num_heads)
    assert out.shape == (B, S, d_model)
    # bf16 MXU operands / bf16 probs (f32 accumulation, f32 m & l) -> compare
    # against the pure-f32 reference at bf16-level tolerance.
    assert jnp.allclose(out, ref, atol=5e-2, rtol=5e-2), (
        "mismatch vs. reference, max abs err = "
        f"{float(jnp.max(jnp.abs(out - ref)))}")

    print("KERNEL_OK")
</pallas_src>

<mosaic_0001>
module attributes {stable_mosaic.version = 11 : i64} {
  func.func @qkv_proj_kernel(%arg0: i32, %arg1: i32, %arg2: memref<1x8x32xf32, #tpu.memory_space<vmem>>, %arg3: memref<1x8x32xf32, #tpu.memory_space<vmem>>, %arg4: memref<1x8x32xf32, #tpu.memory_space<vmem>>, %arg5: memref<32x32xbf16, #tpu.memory_space<vmem>>, %arg6: memref<32x32xbf16, #tpu.memory_space<vmem>>, %arg7: memref<32x32xbf16, #tpu.memory_space<vmem>>, %arg8: memref<1x32xf32, #tpu.memory_space<vmem>>, %arg9: memref<1x32xf32, #tpu.memory_space<vmem>>, %arg10: memref<1x32xf32, #tpu.memory_space<vmem>>, %arg11: memref<1x4x8x8xbf16, #tpu.memory_space<vmem>>, %arg12: memref<1x4x8x8xbf16, #tpu.memory_space<vmem>>, %arg13: memref<1x4x8x8xbf16, #tpu.memory_space<vmem>>) attributes {dimension_semantics = [#tpu.dimension_semantics<parallel>, #tpu.dimension_semantics<parallel>], iteration_bounds = array<i64: 2, 1>, scalar_prefetch = 0 : i64, scratch_operands = 0 : i64, tpu.core_type = #tpu.core_type<tc>, window_params = [{transform_indices = @transform_0, window_bounds = array<i64: 1, 8, 32>}, {transform_indices = @transform_1, window_bounds = array<i64: 1, 8, 32>}, {transform_indices = @transform_2, window_bounds = array<i64: 1, 8, 32>}, {pipeline_mode = #tpu.pipeline_mode<synchronous>, transform_indices = @transform_3, window_bounds = array<i64: 32, 32>}, {pipeline_mode = #tpu.pipeline_mode<synchronous>, transform_indices = @transform_4, window_bounds = array<i64: 32, 32>}, {pipeline_mode = #tpu.pipeline_mode<synchronous>, transform_indices = @transform_5, window_bounds = array<i64: 32, 32>}, {pipeline_mode = #tpu.pipeline_mode<synchronous>, transform_indices = @transform_6, window_bounds = array<i64: 1, 32>}, {pipeline_mode = #tpu.pipeline_mode<synchronous>, transform_indices = @transform_7, window_bounds = array<i64: 1, 32>}, {pipeline_mode = #tpu.pipeline_mode<synchronous>, transform_indices = @transform_8, window_bounds = array<i64: 1, 32>}, {transform_indices = @transform_9, window_bounds = array<i64: 1, 4, 8, 8>}, {transform_indices = @transform_10, window_bounds = array<i64: 1, 4, 8, 8>}, {transform_indices = @transform_11, window_bounds = array<i64: 1, 4, 8, 8>}]} {
    %c0 = arith.constant 0 : index
    %c0_0 = arith.constant 0 : index
    %c0_1 = arith.constant 0 : index
    %0 = vector.load %arg2[%c0, %c0_0, %c0_1] : memref<1x8x32xf32, #tpu.memory_space<vmem>>, vector<1x8x32xf32>
    %1 = vector.shape_cast %0 : vector<1x8x32xf32> to vector<8x32xf32>
    %2 = arith.truncf %1 : vector<8x32xf32> to vector<8x32xbf16>
    %c0_2 = arith.constant 0 : index
    %c0_3 = arith.constant 0 : index
    %c0_4 = arith.constant 0 : index
    %3 = vector.load %arg3[%c0_2, %c0_3, %c0_4] : memref<1x8x32xf32, #tpu.memory_space<vmem>>, vector<1x8x32xf32>
    %4 = vector.shape_cast %3 : vector<1x8x32xf32> to vector<8x32xf32>
    %5 = arith.truncf %4 : vector<8x32xf32> to vector<8x32xbf16>
    %c0_5 = arith.constant 0 : index
    %c0_6 = arith.constant 0 : index
    %c0_7 = arith.constant 0 : index
    %6 = vector.load %arg4[%c0_5, %c0_6, %c0_7] : memref<1x8x32xf32, #tpu.memory_space<vmem>>, vector<1x8x32xf32>
    %7 = vector.shape_cast %6 : vector<1x8x32xf32> to vector<8x32xf32>
    %8 = arith.truncf %7 : vector<8x32xf32> to vector<8x32xbf16>
    %c0_8 = arith.constant 0 : index
    %c0_9 = arith.constant 0 : index
    %9 = vector.load %arg5[%c0_8, %c0_9] : memref<32x32xbf16, #tpu.memory_space<vmem>>, vector<32x32xbf16>
    %cst = arith.constant dense<0.000000e+00> : vector<8x32xf32>
    %10 = tpu.matmul %2, %9, %cst {dimension_numbers = #tpu.dot_dimension_numbers<[1], [0], [0], [1], [0, 0, 1, 1], [], []>} : vector<8x32xbf16>, vector<32x32xbf16>, vector<8x32xf32> -> vector<8x32xf32>
    %c0_10 = arith.constant 0 : index
    %c0_11 = arith.constant 0 : index
    %11 = vector.load %arg8[%c0_10, %c0_11] : memref<1x32xf32, #tpu.memory_space<vmem>>, vector<1x32xf32>
    %12 = vector.broadcast %11 : vector<1x32xf32> to vector<8x32xf32>
    %13 = arith.addf %10, %12 : vector<8x32xf32>
    %c0_12 = arith.constant 0 : index
    %c0_13 = arith.constant 0 : index
    %14 = vector.load %arg6[%c0_12, %c0_13] : memref<32x32xbf16, #tpu.memory_space<vmem>>, vector<32x32xbf16>
    %cst_14 = arith.constant dense<0.000000e+00> : vector<8x32xf32>
    %15 = tpu.matmul %5, %14, %cst_14 {dimension_numbers = #tpu.dot_dimension_numbers<[1], [0], [0], [1], [0, 0, 1, 1], [], []>} : vector<8x32xbf16>, vector<32x32xbf16>, vector<8x32xf32> -> vector<8x32xf32>
    %c0_15 = arith.constant 0 : index
    %c0_16 = arith.constant 0 : index
    %16 = vector.load %arg9[%c0_15, %c0_16] : memref<1x32xf32, #tpu.memory_space<vmem>>, vector<1x32xf32>
    %17 = vector.broadcast %16 : vector<1x32xf32> to vector<8x32xf32>
    %18 = arith.addf %15, %17 : vector<8x32xf32>
    %c0_17 = arith.constant 0 : index
    %c0_18 = arith.constant 0 : index
    %19 = vector.load %arg7[%c0_17, %c0_18] : memref<32x32xbf16, #tpu.memory_space<vmem>>, vector<32x32xbf16>
    %cst_19 = arith.constant dense<0.000000e+00> : vector<8x32xf32>
    %20 = tpu.matmul %8, %19, %cst_19 {dimension_numbers = #tpu.dot_dimension_numbers<[1], [0], [0], [1], [0, 0, 1, 1], [], []>} : vector<8x32xbf16>, vector<32x32xbf16>, vector<8x32xf32> -> vector<8x32xf32>
    %c0_20 = arith.constant 0 : index
    %c0_21 = arith.constant 0 : index
    %21 = vector.load %arg10[%c0_20, %c0_21] : memref<1x32xf32, #tpu.memory_space<vmem>>, vector<1x32xf32>
    %22 = vector.broadcast %21 : vector<1x32xf32> to vector<8x32xf32>
    %23 = arith.addf %20, %22 : vector<8x32xf32>
    %cst_22 = arith.constant 0.353553385 : f32
    %24 = vector.broadcast %cst_22 : f32 to vector<8x32xf32>
    %25 = arith.mulf %13, %24 : vector<8x32xf32>
    %26 = arith.truncf %25 : vector<8x32xf32> to vector<8x32xbf16>
    %27 = arith.truncf %18 : vector<8x32xf32> to vector<8x32xbf16>
    %28 = arith.truncf %23 : vector<8x32xf32> to vector<8x32xbf16>
    %29 = vector.extract_strided_slice %26 {offsets = [0, 0], sizes = [8, 8], strides = [1, 1]} : vector<8x32xbf16> to vector<8x8xbf16>
    %c0_23 = arith.constant 0 : index
    %c0_24 = arith.constant 0 : index
    %c0_25 = arith.constant 0 : index
    %c0_26 = arith.constant 0 : index
    %30 = vector.load %arg11[%c0_23, %c0_24, %c0_25, %c0_26] : memref<1x4x8x8xbf16, #tpu.memory_space<vmem>>, vector<1x1x8x8xbf16>
    %31 = vector.shape_cast %30 : vector<1x1x8x8xbf16> to vector<8x8xbf16>
    %32 = vector.shape_cast %29 : vector<8x8xbf16> to vector<1x1x8x8xbf16>
    tpu.vector_store %arg11[%c0_23, %c0_24, %c0_25, %c0_26], %32 {strides = array<i32>} : memref<1x4x8x8xbf16, #tpu.memory_space<vmem>>, vector<1x1x8x8xbf16>,
    %33 = vector.extract_strided_slice %27 {offsets = [0, 0], sizes = [8, 8], strides = [1, 1]} : vector<8x32xbf16> to vector<8x8xbf16>
    %c0_27 = arith.constant 0 : index
    %c0_28 = arith.constant 0 : index
    %c0_29 = arith.constant 0 : index
    %c0_30 = arith.constant 0 : index
    %34 = vector.load %arg12[%c0_27, %c0_28, %c0_29, %c0_30] : memref<1x4x8x8xbf16, #tpu.memory_space<vmem>>, vector<1x1x8x8xbf16>
    %35 = vector.shape_cast %34 : vector<1x1x8x8xbf16> to vector<8x8xbf16>
    %36 = vector.shape_cast %33 : vector<8x8xbf16> to vector<1x1x8x8xbf16>
    tpu.vector_store %arg12[%c0_27, %c0_28, %c0_29, %c0_30], %36 {strides = array<i32>} : memref<1x4x8x8xbf16, #tpu.memory_space<vmem>>, vector<1x1x8x8xbf16>,
    %37 = vector.extract_strided_slice %28 {offsets = [0, 0], sizes = [8, 8], strides = [1, 1]} : vector<8x32xbf16> to vector<8x8xbf16>
    %c0_31 = arith.constant 0 : index
    %c0_32 = arith.constant 0 : index
    %c0_33 = arith.constant 0 : index
    %c0_34 = arith.constant 0 : index
    %38 = vector.load %arg13[%c0_31, %c0_32, %c0_33, %c0_34] : memref<1x4x8x8xbf16, #tpu.memory_space<vmem>>, vector<1x1x8x8xbf16>
    %39 = vector.shape_cast %38 : vector<1x1x8x8xbf16> to vector<8x8xbf16>
    %40 = vector.shape_cast %37 : vector<8x8xbf16> to vector<1x1x8x8xbf16>
    tpu.vector_store %arg13[%c0_31, %c0_32, %c0_33, %c0_34], %40 {strides = array<i32>} : memref<1x4x8x8xbf16, #tpu.memory_space<vmem>>, vector<1x1x8x8xbf16>,
    %41 = vector.extract_strided_slice %26 {offsets = [0, 8], sizes = [8, 8], strides = [1, 1]} : vector<8x32xbf16> to vector<8x8xbf16>
    %c0_35 = arith.constant 0 : index
    %c1 = arith.constant 1 : index
    %c0_36 = arith.constant 0 : index
    %c0_37 = arith.constant 0 : index
    %42 = vector.load %arg11[%c0_35, %c1, %c0_36, %c0_37] : memref<1x4x8x8xbf16, #tpu.memory_space<vmem>>, vector<1x1x8x8xbf16>
    %43 = vector.shape_cast %42 : vector<1x1x8x8xbf16> to vector<8x8xbf16>
    %44 = vector.shape_cast %41 : vector<8x8xbf16> to vector<1x1x8x8xbf16>
    tpu.vector_store %arg11[%c0_35, %c1, %c0_36, %c0_37], %44 {strides = array<i32>} : memref<1x4x8x8xbf16, #tpu.memory_space<vmem>>, vector<1x1x8x8xbf16>,
    %45 = vector.extract_strided_slice %27 {offsets = [0, 8], sizes = [8, 8], strides = [1, 1]} : vector<8x32xbf16> to vector<8x8xbf16>
    %c0_38 = arith.constant 0 : index
    %c1_39 = arith.constant 1 : index
    %c0_40 = arith.constant 0 : index
    %c0_41 = arith.constant 0 : index
    %46 = vector.load %arg12[%c0_38, %c1_39, %c0_40, %c0_41] : memref<1x4x8x8xbf16, #tpu.memory_space<vmem>>, vector<1x1x8x8xbf16>
    %47 = vector.shape_cast %46 : vector<1x1x8x8xbf16> to vector<8x8xbf16>
    %48 = vector.shape_cast %45 : vector<8x8xbf16> to vector<1x1x8x8xbf16>
    tpu.vector_store %arg12[%c0_38, %c1_39, %c0_40, %c0_41], %48 {strides = array<i32>} : memref<1x4x8x8xbf16, #tpu.memory_space<vmem>>, vector<1x1x8x8xbf16>,
    %49 = vector.extract_strided_slice %28 {offsets = [0, 8], sizes = [8, 8], strides = [1, 1]} : vector<8x32xbf16> to vector<8x8xbf16>
    %c0_42 = arith.constant 0 : index
    %c1_43 = arith.constant 1 : index
    %c0_44 = arith.constant 0 : index
    %c0_45 = arith.constant 0 : index
    %50 = vector.load %arg13[%c0_42, %c1_43, %c0_44, %c0_45] : memref<1x4x8x8xbf16, #tpu.memory_space<vmem>>, vector<1x1x8x8xbf16>
    %51 = vector.shape_cast %50 : vector<1x1x8x8xbf16> to vector<8x8xbf16>
    %52 = vector.shape_cast %49 : vector<8x8xbf16> to vector<1x1x8x8xbf16>
    tpu.vector_store %arg13[%c0_42, %c1_43, %c0_44, %c0_45], %52 {strides = array<i32>} : memref<1x4x8x8xbf16, #tpu.memory_space<vmem>>, vector<1x1x8x8xbf16>,
    %53 = vector.extract_strided_slice %26 {offsets = [0, 16], sizes = [8, 8], strides = [1, 1]} : vector<8x32xbf16> to vector<8x8xbf16>
    %c0_46 = arith.constant 0 : index
    %c2 = arith.constant 2 : index
    %c0_47 = arith.constant 0 : index
    %c0_48 = arith.constant 0 : index
    %54 = vector.load %arg11[%c0_46, %c2, %c0_47, %c0_48] : memref<1x4x8x8xbf16, #tpu.memory_space<vmem>>, vector<1x1x8x8xbf16>
    %55 = vector.shape_cast %54 : vector<1x1x8x8xbf16> to vector<8x8xbf16>
    %56 = vector.shape_cast %53 : vector<8x8xbf16> to vector<1x1x8x8xbf16>
    tpu.vector_store %arg11[%c0_46, %c2, %c0_47, %c0_48], %56 {strides = array<i32>} : memref<1x4x8x8xbf16, #tpu.memory_space<vmem>>, vector<1x1x8x8xbf16>,
    %57 = vector.extract_strided_slice %27 {offsets = [0, 16], sizes = [8, 8], strides = [1, 1]} : vector<8x32xbf16> to vector<8x8xbf16>
    %c0_49 = arith.constant 0 : index
    %c2_50 = arith.constant 2 : index
    %c0_51 = arith.constant 0 : index
    %c0_52 = arith.constant 0 : index
    %58 = vector.load %arg12[%c0_49, %c2_50, %c0_51, %c0_52] : memref<1x4x8x8xbf16, #tpu.memory_space<vmem>>, vector<1x1x8x8xbf16>
    %59 = vector.shape_cast %58 : vector<1x1x8x8xbf16> to vector<8x8xbf16>
    %60 = vector.shape_cast %57 : vector<8x8xbf16> to vector<1x1x8x8xbf16>
    tpu.vector_store %arg12[%c0_49, %c2_50, %c0_51, %c0_52], %60 {strides = array<i32>} : memref<1x4x8x8xbf16, #tpu.memory_space<vmem>>, vector<1x1x8x8xbf16>,
    %61 = vector.extract_strided_slice %28 {offsets = [0, 16], sizes = [8, 8], strides = [1, 1]} : vector<8x32xbf16> to vector<8x8xbf16>
    %c0_53 = arith.constant 0 : index
    %c2_54 = arith.constant 2 : index
    %c0_55 = arith.constant 0 : index
    %c0_56 = arith.constant 0 : index
    %62 = vector.load %arg13[%c0_53, %c2_54, %c0_55, %c0_56] : memref<1x4x8x8xbf16, #tpu.memory_space<vmem>>, vector<1x1x8x8xbf16>
    %63 = vector.shape_cast %62 : vector<1x1x8x8xbf16> to vector<8x8xbf16>
    %64 = vector.shape_cast %61 : vector<8x8xbf16> to vector<1x1x8x8xbf16>
    tpu.vector_store %arg13[%c0_53, %c2_54, %c0_55, %c0_56], %64 {strides = array<i32>} : memref<1x4x8x8xbf16, #tpu.memory_space<vmem>>, vector<1x1x8x8xbf16>,
    %65 = vector.extract_strided_slice %26 {offsets = [0, 24], sizes = [8, 8], strides = [1, 1]} : vector<8x32xbf16> to vector<8x8xbf16>
    %c0_57 = arith.constant 0 : index
    %c3 = arith.constant 3 : index
    %c0_58 = arith.constant 0 : index
    %c0_59 = arith.constant 0 : index
    %66 = vector.load %arg11[%c0_57, %c3, %c0_58, %c0_59] : memref<1x4x8x8xbf16, #tpu.memory_space<vmem>>, vector<1x1x8x8xbf16>
    %67 = vector.shape_cast %66 : vector<1x1x8x8xbf16> to vector<8x8xbf16>
    %68 = vector.shape_cast %65 : vector<8x8xbf16> to vector<1x1x8x8xbf16>
    tpu.vector_store %arg11[%c0_57, %c3, %c0_58, %c0_59], %68 {strides = array<i32>} : memref<1x4x8x8xbf16, #tpu.memory_space<vmem>>, vector<1x1x8x8xbf16>,
    %69 = vector.extract_strided_slice %27 {offsets = [0, 24], sizes = [8, 8], strides = [1, 1]} : vector<8x32xbf16> to vector<8x8xbf16>
    %c0_60 = arith.constant 0 : index
    %c3_61 = arith.constant 3 : index
    %c0_62 = arith.constant 0 : index
    %c0_63 = arith.constant 0 : index
    %70 = vector.load %arg12[%c0_60, %c3_61, %c0_62, %c0_63] : memref<1x4x8x8xbf16, #tpu.memory_space<vmem>>, vector<1x1x8x8xbf16>
    %71 = vector.shape_cast %70 : vector<1x1x8x8xbf16> to vector<8x8xbf16>
    %72 = vector.shape_cast %69 : vector<8x8xbf16> to vector<1x1x8x8xbf16>
    tpu.vector_store %arg12[%c0_60, %c3_61, %c0_62, %c0_63], %72 {strides = array<i32>} : memref<1x4x8x8xbf16, #tpu.memory_space<vmem>>, vector<1x1x8x8xbf16>,
    %73 = vector.extract_strided_slice %28 {offsets = [0, 24], sizes = [8, 8], strides = [1, 1]} : vector<8x32xbf16> to vector<8x8xbf16>
    %c0_64 = arith.constant 0 : index
    %c3_65 = arith.constant 3 : index
    %c0_66 = arith.constant 0 : index
    %c0_67 = arith.constant 0 : index
    %74 = vector.load %arg13[%c0_64, %c3_65, %c0_66, %c0_67] : memref<1x4x8x8xbf16, #tpu.memory_space<vmem>>, vector<1x1x8x8xbf16>
    %75 = vector.shape_cast %74 : vector<1x1x8x8xbf16> to vector<8x8xbf16>
    %76 = vector.shape_cast %73 : vector<8x8xbf16> to vector<1x1x8x8xbf16>
    tpu.vector_store %arg13[%c0_64, %c3_65, %c0_66, %c0_67], %76 {strides = array<i32>} : memref<1x4x8x8xbf16, #tpu.memory_space<vmem>>, vector<1x1x8x8xbf16>,
    return
  }
  func.func @transform_0(%arg0: i32, %arg1: i32) -> (i32, i32, i32) {
    %c0_i32 = arith.constant 0 : i32
    %c0_i32_0 = arith.constant 0 : i32
    return %arg0, %arg1, %c0_i32 : i32, i32, i32
  }
  func.func @transform_1(%arg0: i32, %arg1: i32) -> (i32, i32, i32) {
    %c0_i32 = arith.constant 0 : i32
    %c0_i32_0 = arith.constant 0 : i32
    return %arg0, %arg1, %c0_i32 : i32, i32, i32
  }
  func.func @transform_2(%arg0: i32, %arg1: i32) -> (i32, i32, i32) {
    %c0_i32 = arith.constant 0 : i32
    %c0_i32_0 = arith.constant 0 : i32
    return %arg0, %arg1, %c0_i32 : i32, i32, i32
  }
  func.func @transform_3(%arg0: i32, %arg1: i32) -> (i32, i32) {
    %c0_i32 = arith.constant 0 : i32
    %c0_i32_0 = arith.constant 0 : i32
    %c0_i32_1 = arith.constant 0 : i32
    return %c0_i32, %c0_i32_0 : i32, i32
  }
  func.func @transform_4(%arg0: i32, %arg1: i32) -> (i32, i32) {
    %c0_i32 = arith.constant 0 : i32
    %c0_i32_0 = arith.constant 0 : i32
    %c0_i32_1 = arith.constant 0 : i32
    return %c0_i32, %c0_i32_0 : i32, i32
  }
  func.func @transform_5(%arg0: i32, %arg1: i32) -> (i32, i32) {
    %c0_i32 = arith.constant 0 : i32
    %c0_i32_0 = arith.constant 0 : i32
    %c0_i32_1 = arith.constant 0 : i32
    return %c0_i32, %c0_i32_0 : i32, i32
  }
  func.func @transform_6(%arg0: i32, %arg1: i32) -> (i32, i32) {
    %c0_i32 = arith.constant 0 : i32
    %c0_i32_0 = arith.constant 0 : i32
    %c0_i32_1 = arith.constant 0 : i32
    return %c0_i32, %c0_i32_0 : i32, i32
  }
  func.func @transform_7(%arg0: i32, %arg1: i32) -> (i32, i32) {
    %c0_i32 = arith.constant 0 : i32
    %c0_i32_0 = arith.constant 0 : i32
    %c0_i32_1 = arith.constant 0 : i32
    return %c0_i32, %c0_i32_0 : i32, i32
  }
  func.func @transform_8(%arg0: i32, %arg1: i32) -> (i32, i32) {
    %c0_i32 = arith.constant 0 : i32
    %c0_i32_0 = arith.constant 0 : i32
    %c0_i32_1 = arith.constant 0 : i32
    return %c0_i32, %c0_i32_0 : i32, i32
  }
  func.func @transform_9(%arg0: i32, %arg1: i32) -> (i32, i32, i32, i32) {
    %c0_i32 = arith.constant 0 : i32
    %c0_i32_0 = arith.constant 0 : i32
    %c0_i32_1 = arith.constant 0 : i32
    return %arg0, %c0_i32, %arg1, %c0_i32_0 : i32, i32, i32, i32
  }
  func.func @transform_10(%arg0: i32, %arg1: i32) -> (i32, i32, i32, i32) {
    %c0_i32 = arith.constant 0 : i32
    %c0_i32_0 = arith.constant 0 : i32
    %c0_i32_1 = arith.constant 0 : i32
    return %arg0, %c0_i32, %arg1, %c0_i32_0 : i32, i32, i32, i32
  }
  func.func @transform_11(%arg0: i32, %arg1: i32) -> (i32, i32, i32, i32) {
    %c0_i32 = arith.constant 0 : i32
    %c0_i32_0 = arith.constant 0 : i32
    %c0_i32_1 = arith.constant 0 : i32
    return %arg0, %c0_i32, %arg1, %c0_i32_0 : i32, i32, i32, i32
  }
}

</mosaic_0001>

<bundles_post_ra>
// kernel: tpu_custom_call.1
= control target key start
LH: loop header
LB: loop body
LE: loop exit
PB: predicated region body
PF: predicated region fallthrough
CT: control target
= control target key end

     0   :  { %s2491_s0 = inlined_call_operand.hbm [shape: f32[2,8,32], index: 0, kind: input, shape index: {}]   ;;  %s2492_s1 = inlined_call_operand.hbm [shape: f32[2,8,32], index: 1, kind: input, shape index: {}]   ;;  %s2493_s2 = inlined_call_operand.hbm [shape: f32[2,8,32], index: 2, kind: input, shape index: {}]   ;;  %s2494_s3 = inlined_call_operand.hbm [shape: bf16[32,32], index: 3, kind: input, shape index: {}]   ;;  %s2495_s4 = inlined_call_operand.hbm [shape: bf16[32,32], index: 4, kind: input, shape index: {}]   ;;  %s2496_s5 = inlined_call_operand.hbm [shape: bf16[32,32], index: 5, kind: input, shape index: {}]   ;;  %s2497_s6 = inlined_call_operand.hbm [shape: f32[1,32], index: 6, kind: input, shape index: {}]   ;;  %s2498_s7 = inlined_call_operand.hbm [shape: f32[1,32], index: 7, kind: input, shape index: {}]   ;;  %s2499_s8 = inlined_call_operand.hbm [shape: f32[1,32], index: 8, kind: input, shape index: {}]   ;;  %s2500_s9 = inlined_call_operand.hbm [shape: bf16[2,4,8,8], index: 9, kind: output, shape index: {0}]   ;;  %s2501_s10 = inlined_call_operand.hbm [shape: bf16[2,4,8,8], index: 10, kind: output, shape index: {1}]   ;;  %s2502_s11 = inlined_call_operand.hbm [shape: bf16[2,4,8,8], index: 11, kind: output, shape index: {2}]  }
   0x1   :  { %2531 = sst [smem:[#allocation37_spill]] %s2492_s1 }
   0x2   :  { %2532 = sst [smem:[#allocation38_spill]] %s2494_s3 }
   0x3   :  { %2533 = sst [smem:[#allocation39_spill]] %s2496_s5 }
   0x4   :  { %2534 = sst [smem:[#allocation40_spill]] %s2498_s7 }
   0x5   :  { %2535 = sst [smem:[#allocation41_spill]] %s2500_s9 }
   0x6   :  { %2536 = sst [smem:[#allocation42_spill]] %s2501_s10 }
   0x7   :  { %2537 = sst [smem:[#allocation43_spill]] %s2502_s11 }
   0x8   :  { %17 = vsyncpa [#allocation3], 0 }
   0x9   :  { %19 = vsyncpa [#allocation3 + $0x1], 0 }
   0xa   :  { %20 = vsyncpa [#allocation6], 0 }
   0xb   :  { %22 = vsyncpa [#allocation6 + $0x1], 0 }
   0xc   :  { %23 = vsyncpa [#allocation9], 0 }
   0xd   :  { %24 = vsyncpa [#allocation12], 0 }
   0xe   :  { %25 = vsyncpa [#allocation15], 0 }
   0xf   :  { %26 = vsyncpa [#allocation4], 0 }
  0x10   :  { %28 = vsyncpa [#allocation4 + $0x1], 0 }
  0x11   :  { %29 = vsyncpa [#allocation19], 0 }
  0x12   :  { %31 = vsyncpa [#allocation19 + $0x1], 0  ;;  %s1937_s17 = smov 0   ;;  %s1939_s18 = smov 0  }
  0x13   :  { %s1941_s19 = smov 0   ;;  %s1943_s20 = smov 0  }
  0x14   :  { %s1945_s21 = smov 0   ;;  %s1947_s22 = smov 0  }
  0x15 LB: > { %2538 = sst [smem:[#allocation28_spill]] %s1834_s17  ;;  %s1968_s23 = sadd.s32 4294967295, %s1854_s22   ;;  %s1854_s22 = sphi %s1947_s22, %s37_s22   ;;  %s1850_s21 = sphi %s1945_s21, %s2592_s21   ;;  %s1846_s20 = sphi %s1943_s20, %s2591_s20   ;;  %s1842_s19 = sphi %s1941_s19, %s2595_s19   ;;  %s1838_s18 = sphi %s1939_s18, %s2594_s18   ;;  %s1834_s17 = sphi %s1937_s17, %s2593_s17  }
  0x16   : > { %2539 = sst [smem:[#allocation29_spill]] %s1846_s20  ;;  %p1179_p0 = scmp.ge.s32.totalorder %s1854_s22, 1 }
  0x17   : > { %2540 = sst [smem:[#allocation30_spill]] %s1850_s21  ;;  %p2507_p1 = scmp.eq.s32.totalorder %s1968_s23, 0 }
  0x18   : > { %2541 = sst [smem:[#allocation31_spill]] %s1854_s22  ;;  %p348_p2 = scmp.lt.s32.totalorder %s1854_s22, 3 }
  0x19   : > { %s1856_s25 = smov [#allocation8]   ;;  %s1857_s28 = smov [#allocation11]  }
  0x1a   : > { %p1973_p3 = pnand %p1179_p0, %p348_p2  ;;  %s360_s26 = sshll.u32 %s1856_s25, 4  ;;  %s1977_s26 = int_to_ptr.vmem [resolvable:$true] %s360_s26 }
  0x1b   : > { %s386_s29 = sshll.u32 %s1857_s28, 4  ;;  %s1858_s30 = smov [#allocation14]   ;;  %s1988_s29 = int_to_ptr.vmem [resolvable:$true] %s386_s29 }
  0x1c   : > { %s2542_s24 = scalar_select %p1973_p3, 1, 0 }
  0x1d   : > { %p1316_p4 = pneg %p1973_p3  ;;  %s1990_s12 = sshll.u32 %s1858_s30, 4  ;;  %s412_s12 = int_to_ptr.vmem [resolvable:$true] %s1990_s12 }
  0x1e   : > { %2543 = sst [smem:[#allocation32_spill]] %s2542_s24  ;;  %s2545_s3 = sld [smem:[#allocation38_spill]] }
  0x1f   : > { %p1984_p6 = pnand %p1316_p4, %p2507_p1 }
  0x21   : > { %s2544_s27 = scalar_select %p1984_p6, 1, 0 }
  0x22   : > { %p2000_p8 = pneg %p1984_p6 }
  0x24   : > { %s1438_s15 = scalar_lea.hbm %s2545_s3, 256 }
  0x25   : > { %p1439_p7 = scmp.ne.s32.totalorder %s2545_s3, %s1438_s15  ;;  %p1445_p11 = scmp.lt.u32.totalorder %s1438_s15, %s2545_s3 }
  0x26   : > { %s2546_s11 = scalar_select %p2000_p8, 1, 0 }
  0x27   : > { %p1441_p9 = pnand %p2000_p8, %p1439_p7 }
  0x29   : > { %p1442_p10 = pneg %p1441_p9 }
  0x2b   : > { %p1447_p12 = pnand %p1445_p11, %p1442_p10 }
  0x2d   : > { %1450 = shalt.err (!%p1447_p12)
}
  0x2e   : > { %s1451_s13 = scalar_lea.vmem %s1977_s26, 256  ;;  %p1459_p4 = scmp.lt.s32.totalorder %s1977_s26, %s1977_s26 }
  0x2f   : > { %p1452_p13 = scmp.ne.s32.totalorder %s1977_s26, %s1451_s13  ;;  %p1460_p5 = scmp.lt.s32.totalorder %s1451_s13, %s1451_s13 }
  0x31   : > { %p1454_p0 = pnand %p1452_p13, %p2000_p8  ;;  %p1461_p7 = por %p1460_p5, %p1459_p4 }
  0x33   : > { %p1455_p2 = pneg %p1454_p0 }
  0x35   : > { %p1462_p9 = pnand %p1461_p7, %p1455_p2 }
  0x37   : > { %1465 = shalt.err (!%p1462_p9)
}
  0x38   : > { %s2510_s14 = smov 64   ;;  %s2511_s15 = smov 4  }
  0x39   : > { %1319 = dma.hbm_to_vmem [thread:$0]  (!%p1984_p6), %s2545_s3, 256, %s1977_s26, [#allocation9], %s2510_s14, %s2510_s14, %s2511_s15  }
  0x3a   : > { %s2547_s5 = sld [smem:[#allocation39_spill]] }
  0x40   : > { %s1466_s13 = scalar_lea.hbm %s2547_s5, 256 }
  0x41   : > { %p1467_p5 = scmp.ne.s32.totalorder %s2547_s5, %s1466_s13  ;;  %p1473_p12 = scmp.lt.u32.totalorder %s1466_s13, %s2547_s5 }
  0x43   : > { %p1469_p10 = pnand %p1467_p5, %p2000_p8 }
  0x45   : > { %p1470_p11 = pneg %p1469_p10 }
  0x47   : > { %p1475_p13 = pnand %p1473_p12, %p1470_p11 }
  0x49   : > { %1478 = shalt.err (!%p1475_p13)
}
  0x4a   : > { %s1479_s26 = scalar_lea.vmem %s1988_s29, 256  ;;  %p1487_p7 = scmp.lt.s32.totalorder %s1988_s29, %s1988_s29 }
  0x4b   : > { %p1480_p0 = scmp.ne.s32.totalorder %s1988_s29, %s1479_s26  ;;  %p1488_p9 = scmp.lt.s32.totalorder %s1479_s26, %s1479_s26 }
  0x4d   : > { %p1482_p2 = pnand %p1480_p0, %p2000_p8  ;;  %p1489_p5 = por %p1488_p9, %p1487_p7 }
  0x4f   : > { %p1483_p4 = pneg %p1482_p2 }
  0x51   : > { %p1490_p10 = pnand %p1489_p5, %p1483_p4 }
  0x53   : > { %1493 = shalt.err (!%p1490_p10)
}
  0x54   : > { %1325 = dma.hbm_to_vmem [thread:$0]  (!%p1984_p6), %s2547_s5, 256, %s1988_s29, [#allocation12], %s2510_s14, %s2510_s14, %s2511_s15  }
  0x55   : > { %s2548_s7 = sld [smem:[#allocation40_spill]] }
  0x5b   : > { %s1494_s16 = scalar_lea.hbm %s2548_s7, 16 }
  0x5c   : > { %p1495_p11 = scmp.ne.s32.totalorder %s2548_s7, %s1494_s16  ;;  %p1501_p0 = scmp.lt.u32.totalorder %s1494_s16, %s2548_s7 }
  0x5e   : > { %p1497_p12 = pnand %p1495_p11, %p2000_p8 }
  0x60   : > { %p1498_p13 = pneg %p1497_p12 }
  0x62   : > { %p1503_p2 = pnand %p1501_p0, %p1498_p13 }
  0x64   : > { %1506 = shalt.err (!%p1503_p2)
}
  0x65   : > { %s1507_s26 = scalar_lea.vmem %s412_s12, 16  ;;  %s1514_s29 = scalar_lea.vmem %s412_s12, 32 }
  0x66   : > { %p1508_p4 = scmp.ne.s32.totalorder %s412_s12, %s1507_s26  ;;  %p1515_p5 = scmp.lt.s32.totalorder %s412_s12, %s412_s12 }
  0x67   : > { %p1516_p10 = scmp.lt.s32.totalorder %s1514_s29, %s1507_s26 }
  0x68   : > { %p1510_p7 = pnand %p1508_p4, %p2000_p8 }
  0x69   : > { %p1517_p1 = por %p1516_p10, %p1515_p5 }
  0x6a   : > { %p1511_p9 = pneg %p1510_p7 }
  0x6c   : > { %p1518_p3 = pnand %p1517_p1, %p1511_p9 }
  0x6e   : > { %1521 = shalt.err (!%p1518_p3)
}
  0x6f   : > { %1331 = dma.hbm_to_vmem [thread:$0]  (!%p1984_p6), %s2548_s7, 16, %s412_s12, [#allocation15]  }
  0x70   : > { %s2509_s20 = sadd.s32 4294967294, %s1854_s22   ;;  %s49_s24 = sadd.s32 1, %s1850_s21 }
  0x71   : > { %s58_s16 = sadd.s32 1, %s1842_s19  ;;  %p51_p1 = scmp.ge.s32.totalorder %s49_s24, 2 }
  0x72   : > { %p65_p3 = scmp.ne.s32.totalorder %s1842_s19, %s1838_s18  ;;  %p66_p11 = scmp.eq.s32.totalorder %s1854_s22, 0 }
  0x73   : > { %p71_p12 = scmp.ne.s32.totalorder %s1838_s18, %s1834_s17  ;;  %s2597_s24 = smov (%p51_p1, %s49_s24), 0 }
  0x74   : > { %2549 = sst [smem:[#allocation33_spill]] %s2597_s24  ;;  %p2079_p13 = por %p66_p11, %p65_p3 }
  0x75   : > { %p2551_p0 = scmp.eq.s32.totalorder %s1968_s23, 0  ;;  %s53_s28 = ssub.s32 %s1850_s21, %s2597_s24 }
  0x76   : > { %p279_p4 = scmp.eq.s32.totalorder %s1968_s23, 1  ;;  %p56_p7 = scmp.eq.s32.totalorder %s53_s28, 0 }
  0x77   : > { %p2085_p2 = por %p2551_p0, %p71_p12  ;;  %p285_p9 = scmp.eq.s32.totalorder %s2509_s20, 1 }
  0x78   : > { %p2094_p5 = por %p279_p4, %p65_p3  ;;  %p1361_p10 = scmp.lt.s32.totalorder %s1854_s22, 2 }
  0x79   : > { %s2552_s12 = scalar_select %p2085_p2, 1, 0 }
  0x7a   : > { %s2553_s30 = scalar_select %p2094_p5, 1, 0 }
  0x7b   : > { %s2100_s13 = scalar_select %p56_p7, %s1842_s19, %s58_s16  }
  0x7c   : > { %2554 = sst [smem:[#allocation34_spill]] %s2553_s30  ;;  %p2102_p1 = por %p285_p9, %p71_p12 }
  0x7d   : > { %2555 = sst [smem:[#allocation35_spill]] %s2100_s13  ;;  %s2512_s29 = sand.u32 1, %s1842_s19  }
  0x7e   : > { %s2556_s26 = scalar_select %p2102_p1, 1, 0 }
  0x7f   : > { %s2109_s9 = sshll.u32 %s2512_s29, 3  ;;  %s2112_s10 = sshll.u32 %s1850_s21, 7 }
  0x80   : > { %2557 = sst [smem:[#allocation36_spill]] %s2556_s26  ;;  %p2116_p3 = pnand %p1361_p10, %p2079_p13 }
  0x81   : > { %s452_s16 = sand.u32 1, %s1854_s22   ;;  %s2559_s1 = sld [smem:[#allocation37_spill]] }
  0x82   : > { %s2558_s28 = scalar_select %p2116_p3, 1, 0 }
  0x83   : > { %s456_s29 = scalar_lea.vmem [#allocation5], %s2109_s9  ;;  %s1861_s25 = smov [#allocation10]  }
  0x84   : > { %s464_s3 = sshll.u32 %s456_s29, 4  ;;  %s2130_s5 = sshll.u32 %s1861_s25, 4  ;;  %s2128_s3 = int_to_ptr.vmem [resolvable:$true] %s464_s3  ;;  %s374_s5 = int_to_ptr.vmem [resolvable:$true] %s2130_s5 }
  0x85   : > { %s2132_s7 = scalar_lea.sflag [#allocation6], %s452_s16  ;;  %p2138_p12 = pneg %p2116_p3 }
  0x87   : > { %s2125_s15 = scalar_lea.hbm %s2559_s1, %s2112_s10  ;;  %s1527_s21 = scalar_lea.hbm %s2559_s1, 256 }
  0x88   : > { %s1522_s24 = scalar_lea.hbm %s2125_s15, 128  ;;  %p1528_p4 = scmp.lt.u32.totalorder %s2125_s15, %s2559_s1 }
  0x89   : > { %p1523_p11 = scmp.ne.s32.totalorder %s2125_s15, %s1522_s24  ;;  %p1529_p7 = scmp.lt.u32.totalorder %s1527_s21, %s1522_s24 }
  0x8a   : > { %s2560_s14 = scalar_select %p2138_p12, 1, 0 }
  0x8b   : > { %p1525_p13 = pnand %p2138_p12, %p1523_p11  ;;  %p1530_p9 = por %p1529_p7, %p1528_p4 }
  0x8c   : > { %p1531_p10 = scmp.lt.u32.totalorder %s1522_s24, %s2125_s15 }
  0x8d   : > { %p1526_p0 = pneg %p1525_p13 }
  0x8e   : > { %p1532_p1 = por %p1531_p10, %p1530_p9 }
  0x90   : > { %p1533_p5 = pnand %p1532_p1, %p1526_p0 }
  0x92   : > { %1536 = shalt.err (!%p1533_p5)
}
  0x93   : > { %s1537_s16 = scalar_lea.vmem %s2128_s3, 128  ;;  %s1862_s20 = smov [#allocation5]  }
  0x94   : > { %p1538_p11 = scmp.ne.s32.totalorder %s2128_s3, %s1537_s16  ;;  %s1542_s29 = sshll.u32 %s1862_s20, 4  ;;  %s1543_s29 = int_to_ptr.vmem [resolvable:$false] %s1542_s29 }
  0x95   : > { %s1544_s13 = scalar_lea.vmem %s1543_s29, 256  ;;  %p1545_p6 = scmp.lt.s32.totalorder %s2128_s3, %s1543_s29 }
  0x96   : > { %p1540_p13 = pnand %p1538_p11, %p2138_p12  ;;  %p1546_p8 = scmp.lt.s32.totalorder %s1544_s13, %s1537_s16 }
  0x98   : > { %p1541_p2 = pneg %p1540_p13  ;;  %p1547_p4 = por %p1546_p8, %p1545_p6 }
  0x9a   : > { %p1548_p7 = pnand %p1547_p4, %p1541_p2 }
  0x9c   : > { %1551 = shalt.err (!%p1548_p7)
}
  0x9d   : > { %1341 = dma.hbm_to_vmem [thread:$0]  (!%p2116_p3), %s2125_s15, 128, %s2128_s3, %s2132_s7  }
  0x9e   : > { %s1552_s25 = scalar_lea.hbm %s2495_s4, 256  ;;  %p2561_p6 = scmp.ne.s32.totalorder %s2546_s11, 0 }
  0x9f   : > { %p1553_p5 = scmp.ne.s32.totalorder %s2495_s4, %s1552_s25  ;;  %p1559_p1 = scmp.lt.u32.totalorder %s1552_s25, %s2495_s4 }
  0xa1   : > { %p1555_p8 = pnand %p1553_p5, %p2561_p6 }
  0xa3   : > { %p1556_p2 = pneg %p1555_p8 }
  0xa5   : > { %p1561_p0 = pnand %p1559_p1, %p1556_p2 }
  0xa7   : > { %1564 = shalt.err (!%p1561_p0)
}
  0xa8   : > { %s1565_s13 = scalar_lea.vmem %s374_s5, 256  ;;  %p1573_p13 = scmp.lt.s32.totalorder %s374_s5, %s374_s5 }
  0xa9   : > { %p1566_p9 = scmp.ne.s32.totalorder %s374_s5, %s1565_s13  ;;  %p1574_p4 = scmp.lt.s32.totalorder %s1565_s13, %s1565_s13 }
  0xab   : > { %p1568_p10 = pnand %p1566_p9, %p2561_p6  ;;  %p1575_p7 = por %p1574_p4, %p1573_p13 }
  0xad   : > { %p1569_p11 = pneg %p1568_p10 }
  0xaf   : > { %p1576_p3 = pnand %p1575_p7, %p1569_p11 }
  0xb1   : > { %1579 = shalt.err (!%p1576_p3)
}
  0xb2   : > { %p2562_p5 = scmp.ne.s32.totalorder %s2544_s27, 0  ;;  %s2563_s1 = smov 4  }
  0xb3   : > { %s2564_s3 = smov 64   ;;  %s1863_s24 = smov [#allocation13]  }
  0xb4   : > { %1322 = dma.hbm_to_vmem [thread:$0]  (!%p2562_p5), %s2495_s4, 256, %s374_s5, [#allocation9], %s2564_s3, %s2564_s3, %s2563_s1  }
  0xb5   : > { %s400_s25 = sshll.u32 %s1863_s24, 4  ;;  %s1864_s20 = smov [#allocation16]   ;;  %s401_s25 = int_to_ptr.vmem [resolvable:$true] %s400_s25 }
  0xb6   : > { %s422_s16 = sshll.u32 %s1864_s20, 4  ;;  %s1580_s22 = scalar_lea.hbm %s2497_s6, 16  ;;  %s423_s16 = int_to_ptr.vmem [resolvable:$true] %s422_s16 }
  0xb7   : > { %p1581_p3 = scmp.ne.s32.totalorder %s2497_s6, %s1580_s22  ;;  %p1587_p1 = scmp.lt.u32.totalorder %s1580_s22, %s2497_s6 }
  0xb9   : > { %p1583_p8 = pnand %p1581_p3, %p2561_p6 }
  0xbb   : > { %p1584_p2 = pneg %p1583_p8 }
  0xbd   : > { %p1589_p0 = pnand %p1587_p1, %p1584_p2 }
  0xbf   : > { %1592 = shalt.err (!%p1589_p0)
}
  0xc0   : > { %s1593_s5 = scalar_lea.vmem %s401_s25, 16  ;;  %s1600_s1 = scalar_lea.vmem %s401_s25, 32 }
  0xc1   : > { %p1594_p9 = scmp.ne.s32.totalorder %s401_s25, %s1593_s5  ;;  %p1601_p13 = scmp.lt.s32.totalorder %s401_s25, %s401_s25 }
  0xc2   : > { %p1602_p4 = scmp.lt.s32.totalorder %s1600_s1, %s1593_s5 }
  0xc3   : > { %p1596_p10 = pnand %p1594_p9, %p2561_p6 }
  0xc4   : > { %p1603_p7 = por %p1602_p4, %p1601_p13 }
  0xc5   : > { %p1597_p11 = pneg %p1596_p10 }
  0xc7   : > { %p1604_p12 = pnand %p1603_p7, %p1597_p11 }
  0xc9   : > { %1607 = shalt.err (!%p1604_p12)
}
  0xca   : > { %1328 = dma.hbm_to_vmem [thread:$0]  (!%p2562_p5), %s2497_s6, 16, %s401_s25, [#allocation12]  }
  0xcb   : > { %s1608_s3 = scalar_lea.hbm %s2499_s8, 16 }
  0xcc   : > { %p1609_p3 = scmp.ne.s32.totalorder %s2499_s8, %s1608_s3  ;;  %p1615_p12 = scmp.lt.u32.totalorder %s1608_s3, %s2499_s8 }
  0xce   : > { %p1611_p8 = pnand %p1609_p3, %p2561_p6 }
  0xd0   : > { %p1612_p2 = pneg %p1611_p8 }
  0xd2   : > { %p1617_p1 = pnand %p1615_p12, %p1612_p2 }
  0xd4   : > { %1620 = shalt.err (!%p1617_p1)
}
  0xd5   : > { %s1621_s13 = scalar_lea.vmem %s423_s16, 16  ;;  %s1628_s25 = scalar_lea.vmem %s423_s16, 32 }
  0xd6   : > { %p1622_p0 = scmp.ne.s32.totalorder %s423_s16, %s1621_s13  ;;  %p1629_p11 = scmp.lt.s32.totalorder %s423_s16, %s423_s16 }
  0xd7   : > { %p1630_p13 = scmp.lt.s32.totalorder %s1628_s25, %s1621_s13 }
  0xd8   : > { %p1624_p9 = pnand %p1622_p0, %p2561_p6 }
  0xd9   : > { %p1631_p4 = por %p1630_p13, %p1629_p11 }
  0xda   : > { %p1625_p10 = pneg %p1624_p9 }
  0xdc   : > { %p1632_p7 = pnand %p1631_p4, %p1625_p10 }
  0xde   : > { %1635 = shalt.err (!%p1632_p7)
}
  0xdf   : > { %1334 = dma.hbm_to_vmem [thread:$0]  (!%p2562_p5), %s2499_s8, 16, %s423_s16, [#allocation15]  }
  0xe0   : > { %s2224_s17 = scalar_lea.hbm %s2491_s0, %s2112_s10  ;;  %s437_s26 = scalar_lea.vmem [#allocation2], %s2109_s9 }
  0xe1   : > { %s445_s27 = sshll.u32 %s437_s26, 4  ;;  %s2233_s3 = scalar_lea.hbm %s2493_s2, %s2112_s10  ;;  %s2227_s27 = int_to_ptr.vmem [resolvable:$true] %s445_s27 }
  0xe2   : > { %s2565_s21 = sand.u32 1, %s1842_s19   ;;  %s1636_s24 = scalar_lea.hbm %s2224_s17, 128 }
  0xe3   : > { %s434_s16 = scalar_lea.sflag [#allocation3], %s2565_s21  ;;  %p1637_p6 = scmp.ne.s32.totalorder %s2224_s17, %s1636_s24 }
  0xe4   : > { %p2566_p5 = scmp.ne.s32.totalorder %s2560_s14, 0  ;;  %s1641_s13 = scalar_lea.hbm %s2491_s0, 256 }
  0xe5   : > { %p1642_p2 = scmp.lt.u32.totalorder %s2224_s17, %s2491_s0  ;;  %p1643_p12 = scmp.lt.u32.totalorder %s1641_s13, %s1636_s24 }
  0xe6   : > { %p1639_p3 = pnand %p1637_p6, %p2566_p5  ;;  %p1645_p0 = scmp.lt.u32.totalorder %s1636_s24, %s2224_s17 }
  0xe7   : > { %p1644_p1 = por %p1643_p12, %p1642_p2 }
  0xe8   : > { %p1640_p8 = pneg %p1639_p3 }
  0xe9   : > { %p1646_p9 = por %p1645_p0, %p1644_p1 }
  0xeb   : > { %p1647_p10 = pnand %p1646_p9, %p1640_p8 }
  0xed   : > { %1650 = shalt.err (!%p1647_p10)
}
  0xee   : > { %s1651_s10 = scalar_lea.vmem %s2227_s27, 128  ;;  %s1865_s5 = smov [#allocation2]  }
  0xef   : > { %p1652_p11 = scmp.ne.s32.totalorder %s2227_s27, %s1651_s10  ;;  %s1656_s11 = sshll.u32 %s1865_s5, 4  ;;  %s1657_s11 = int_to_ptr.vmem [resolvable:$false] %s1656_s11 }
  0xf0   : > { %s1658_s1 = scalar_lea.vmem %s1657_s11, 256  ;;  %p1659_p7 = scmp.lt.s32.totalorder %s2227_s27, %s1657_s11 }
  0xf1   : > { %p1654_p13 = pnand %p1652_p11, %p2566_p5  ;;  %p1660_p6 = scmp.lt.s32.totalorder %s1658_s1, %s1651_s10 }
  0xf3   : > { %p1655_p4 = pneg %p1654_p13  ;;  %p1661_p3 = por %p1660_p6, %p1659_p7 }
  0xf5   : > { %p1662_p2 = pnand %p1661_p3, %p1655_p4 }
  0xf7   : > { %1665 = shalt.err (!%p1662_p2)
}
  0xf8   : > { %p2567_p8 = scmp.ne.s32.totalorder %s2558_s28, 0  ;;  %s475_s26 = scalar_lea.vmem [#allocation7], %s2109_s9 }
  0xf9   : > { %s483_s22 = sshll.u32 %s475_s26, 4  ;;  %s1666_s30 = scalar_lea.hbm %s2233_s3, 128  ;;  %s484_s22 = int_to_ptr.vmem [resolvable:$true] %s483_s22 }
  0xfa   : > { %1338 = dma.hbm_to_vmem [thread:$0]  (!%p2567_p8), %s2224_s17, 128, %s2227_s27, %s434_s16  }
  0xfb   : > { %p1667_p12 = scmp.ne.s32.totalorder %s2233_s3, %s1666_s30  ;;  %s1671_s20 = scalar_lea.hbm %s2493_s2, 256 }
  0xfc   : > { %p1672_p9 = scmp.lt.u32.totalorder %s2233_s3, %s2493_s2  ;;  %p1673_p10 = scmp.lt.u32.totalorder %s1671_s20, %s1666_s30 }
  0xfd   : > { %p1669_p1 = pnand %p1667_p12, %p2566_p5  ;;  %p1675_p13 = scmp.lt.u32.totalorder %s1666_s30, %s2233_s3 }
  0xfe   : > { %p1674_p11 = por %p1673_p10, %p1672_p9 }
  0xff   : > { %p1670_p0 = pneg %p1669_p1 }
 0x100   : > { %p1676_p4 = por %p1675_p13, %p1674_p11 }
 0x102   : > { %p1677_p7 = pnand %p1676_p4, %p1670_p0 }
 0x104   : > { %1680 = shalt.err (!%p1677_p7)
}
 0x105   : > { %s1681_s9 = scalar_lea.vmem %s484_s22, 128  ;;  %s1866_s17 = smov [#allocation7]  }
 0x106   : > { %p1682_p6 = scmp.ne.s32.totalorder %s484_s22, %s1681_s9  ;;  %s1686_s27 = sshll.u32 %s1866_s17, 4  ;;  %s1687_s27 = int_to_ptr.vmem [resolvable:$false] %s1686_s27 }
 0x107   : > { %s1688_s16 = scalar_lea.vmem %s1687_s27, 256  ;;  %p1689_p12 = scmp.lt.s32.totalorder %s484_s22, %s1687_s27 }
 0x108   : > { %p1684_p3 = pnand %p1682_p6, %p2566_p5  ;;  %p1690_p1 = scmp.lt.s32.totalorder %s1688_s16, %s1681_s9 }
 0x10a   : > { %p1685_p2 = pneg %p1684_p3  ;;  %p1691_p8 = por %p1690_p1, %p1689_p12 }
 0x10c   : > { %p1692_p9 = pnand %p1691_p8, %p1685_p2 }
 0x10e   : > { %1695 = shalt.err (!%p1692_p9)
}
 0x10f   : > { %p2568_p10 = scmp.ne.s32.totalorder %s2558_s28, 0  ;;  %s2569_s25 = sld [smem:[#allocation32_spill]] }
 0x111   : > { %1344 = dma.hbm_to_vmem [thread:$0]  (!%p2568_p10), %s2233_s3, 128, %s484_s22, %s2132_s7  }
 0x115   : > { %p2570_p0 = scmp.ne.s32.totalorder %s2569_s25, 0 }
 0x116   : > { %s2280_s14 = sand.u32 (!%p2570_p0), 1, %s1838_s18   ;;  %p2571_p5 = scmp.ne.s32.totalorder (!%p2570_p0), %s2552_s12, 0 }
 0x117   : > { %492 = sbr.rel (%p2570_p0) target bundleno = 707 (0x2c3), region = 56  ;;  %s2283_s15 = sshll.u32 (!%p2570_p0), %s2280_s14, 3 }
 0x118   : > { %s495_s10 = scalar_lea.sflag (!%p2570_p0), [#allocation3], %s2280_s14  ;;  %s498_s5 = scalar_lea.vmem (!%p2570_p0), [#allocation2], %s2283_s15 }
 0x11e   : > { %1805 = dma.done.wait (%p2571_p5), %s495_s10, 128  }
 0x11f   : > { %1807 = vsyncadd (%p2571_p5), %s495_s10, 4294967168  ;;  %s503_s7 = sand.u32 1, %s1968_s23   ;;  %s507_s3 = scalar_lea.vmem [#allocation5], %s2283_s15 }
 0x120   : > { %s504_s28 = scalar_lea.sflag [#allocation6], %s503_s7 }
 0x121   : > { %1809 = dma.done.wait (%p2571_p5), %s504_s28, 256  }
 0x122   : > { %1811 = vsyncadd (%p2571_p5), %s504_s28, 4294967040  ;;  %s516_s11 = scalar_lea.vmem [#allocation7], %s2283_s15  ;;  %p2572_p8 = scmp.eq.s32.totalorder %s1968_s23, 0 }
 0x124   : > { %1813 = dma.done.wait (%p2572_p8), [#allocation9], 512   ;;  %p2573_p11 = pmov %p2572_p8 }
 0x125   : > { %p2574_p13 = pmov %p2572_p8 }
 0x126   : > { %1815 = vsyncadd (%p2573_p11), [#allocation9], 4294966784 }
 0x127   : > { %1817 = dma.done.wait (%p2574_p13), [#allocation12], 272   ;;  %p2575_p4 = pmov %p2572_p8 }
 0x129   : > { %1819 = vsyncadd (%p2575_p4), [#allocation12], 4294967024  ;;  %p2576_p7 = pmov %p2575_p4 }
 0x12a   : > { %p2577_p6 = pmov %p2575_p4 }
 0x12b   : > { %1821 = dma.done.wait (%p2576_p7), [#allocation15], 32  }
 0x12c   : > { %1823 = vsyncadd (%p2577_p6), [#allocation15], 4294967264  ;;  %v1867_v0 = vmov 0.0   ;;  %vm1868_vm0 = vmmov 0   ;;  %v1432_v1 = vld [vmem:[#allocation8] sm:$0xff]   ;;  %v1433_v2 = vld [vmem:[#allocation10] sm:$0xff]  }
 0x12d   : > { %1256 = vmatprep.subr.bf16.mxu0 %v1867_v0  ;;  %1264 = vmatprep.subr.bf16.mxu1 %v1867_v0  ;;  %v1434_v3 = vld [vmem:[#allocation8 + $0x8] sm:$0xff]   ;;  %v1435_v4 = vld [vmem:[#allocation10 + $0x8] sm:$0xff]   ;;  %vm629_vm1 = vcmask 261120   ;;  %v1436_v9 = vld [vmem:[#allocation11] sm:$0xff]   ;;  %s2318_s12 = sshll.u32 %s2280_s14, 4  ;;  %vm809_vm2 = vcmask 60416  }
 0x12e   : > { %1260 = vmatprep.mubr.msk.bf16.mxu0 %vm1868_vm0, %v1867_v0  ;;  %1268 = vmatprep.mubr.msk.bf16.mxu1 %vm1868_vm0, %v1867_v0  ;;  %v600_v5 = vld [vmem:[%s498_s5] sm:$0xff]  ;;  %v602_v6 = vld [vmem:[%s507_s3] sm:$0xff]  ;;  %s2321_s1 = scalar_lea.vmem [#allocation18], %s2318_s12  ;;  %s1869_s26 = smov 104  }
 0x12f   : > { %1257 = vmatpush3.bf16.msra.mxu0 %v1432_v1  ;;  %1265 = vmatpush3.bf16.msra.mxu1 %v1433_v2  ;;  %v601_v7 = vpack.c.bf16 %v600_v5, %v600_v5  ;;  %v603_v8 = vpack.c.bf16 %v602_v6, %v602_v6  ;;  %v1437_v10 = vld [vmem:[#allocation11 + $0x8] sm:$0xff]   ;;  %v604_v11 = vld [vmem:[%s516_s11] sm:$0xff]  ;;  %s1870_s22 = smov 120   ;;  %s2326_s30 = scalar_lea.vmem [#allocation17], %s2318_s12 }
 0x130   : > { %1258 = vmatprep.subr.bf16.mxu0 %v1867_v0  ;;  %1266 = vmatprep.subr.bf16.mxu1 %v1867_v0  ;;  %v605_v12 = vpack.c.bf16 %v604_v11, %v604_v11  ;;  %v1206_v13 = vld [vmem:[#allocation13] ss:$0 sm:$0xff]  ;;  %v1210_v14 = vld [vmem:[#allocation14] ss:$0 sm:$0xff]  ;;  %v1214_v28 = vld [vmem:[#allocation16] ss:$0 sm:$0xff] }
 0x131   : > { %s1871_s21 = smov 112   ;;  %s2578_s24 = sld [smem:[#allocation29_spill]] }
 0x132   : > { %s2331_s20 = scalar_lea.vmem [#allocation20], %s2318_s12  ;;  %s2579_s29 = sld [smem:[#allocation34_spill]] }
 0x133   : > { %1259 = vmatpush3.bf16.msra.mxu0 %v1434_v3  ;;  %1267 = vmatpush3.bf16.msra.mxu1 %v1435_v4  ;;  %s909_s13 = sshll.u32 %s2321_s1, 4  ;;  %s2580_s16 = sld [smem:[#allocation42_spill]]  ;;  %s2339_s13 = int_to_ptr.vmem [resolvable:$true] %s909_s13 }
 0x134   : > { %1272 = vmatprep.subr.bf16.mxu0 %v1867_v0  ;;  %s2357_s15 = scalar_lea.sflag [#allocation19], %s503_s7  ;;  %s1696_s10 = scalar_lea.vmem %s2339_s13, 256 }
 0x135   : > { %p1697_p3 = scmp.ne.s32.totalorder %s2339_s13, %s1696_s10  ;;  %s1872_s5 = smov [#allocation18]  }
 0x136   : > { %1261 = vmatmul.mubr.msk.bf16.vlgmr.msra.gmra.mrb[0].mxu0 %vm629_vm1, %v601_v7  ;;  %1269 = vmatmul.mubr.msk.bf16.vlgmr.msra.gmra.mrb[0].mxu1 %vm629_vm1, %v603_v8  ;;  %s1700_s28 = sshll.u32 %s1872_s5, 4  ;;  %s1701_s28 = int_to_ptr.vmem [resolvable:$false] %s1700_s28 }
 0x137   : > { %1273 = vmatpush3.bf16.msra.mxu0 %v1436_v9  ;;  %1276 = vmatprep.mubr.msk.bf16.mxu0 %vm1868_vm0, %v1867_v0  ;;  %s2337_s9 = sshll.u32 %s2578_s24, 8  ;;  %s1702_s3 = scalar_lea.vmem %s1701_s28, 512 }
 0x138   : > { %1274 = vmatprep.subr.bf16.mxu0 %v1867_v0  ;;  %p2581_p2 = scmp.ne.s32.totalorder %s2579_s29, 0  ;;  %p1703_p9 = scmp.lt.s32.totalorder %s2339_s13, %s1701_s28 }
 0x139   : > { %s2349_s25 = scalar_lea.hbm %s2580_s16, %s2337_s9  ;;  %p1704_p10 = scmp.lt.s32.totalorder %s1702_s3, %s1696_s10 }
 0x13a   : > { %p1698_p12 = pnand %p1697_p3, %p2581_p2 }
 0x13b   : > { %1275 = vmatpush3.bf16.msra.mxu0 %v1437_v10  ;;  %p1705_p0 = por %p1704_p10, %p1703_p9 }
 0x13c   : > { %p1699_p1 = pneg %p1698_p12 }
 0x13e   : > { %1277 = vmatmul.mubr.msk.bf16.vlgmr.msra.gmra.mrb[4].mxu0 %vm629_vm1, %v605_v12  ;;  %p1706_p5 = pnand %p1705_p0, %p1699_p1 }
 0x209   : > { %v667_v15 = vpop.f32.mrb[0].mxu0  ;;  %v733_v17 = vpop.f32.mrb[0].mxu1 }
 0x20a   : > { %v668_v16 = vadd.f32 %v1206_v13, %v667_v15  ;;  %v1262_v18 = vpop.f32.mrb[1].mxu0  ;;  %v734_v19 = vadd.f32 %v1210_v14, %v733_v17  ;;  %v1270_v20 = vpop.f32.mrb[1].mxu1 }
 0x20b   : > { %v670_v21 = vpop.f32.mrb[2].mxu0  ;;  %v736_v23 = vpop.f32.mrb[2].mxu1 }
 0x20c   : > { %v805_v22 = vmul.f32 0.35355338, %v668_v16  ;;  %v1263_v24 = vpop.f32.mrb[3].mxu0  ;;  %v807_v25 = vpack.c.bf16 %v734_v19, %v734_v19  ;;  %v1271_v26 = vpop.f32.mrb[3].mxu1 }
 0x20e   : > { %v806_v27 = vpack.c.bf16 %v805_v22, %v805_v22  ;;  %811 = vst.msk [vmem:[%s2321_s1] sm:$0xf] %vm809_vm2, %v807_v25  ;;  %857 = vrot.lane.b32.xlu1 %v807_v25, %s1869_s26  ;;  %824 = vrot.lane.b32.xlu0 %v807_v25, %s1870_s22 }
 0x210   : > { %810 = vst.msk [vmem:[%s2326_s30] sm:$0xf] %vm809_vm2, %v806_v27 }
 0x211   : > { %v799_v29 = vpop.f32.mrb[4].mxu0 }
 0x212   : > { %v800_v30 = vadd.f32 %v1214_v28, %v799_v29  ;;  %v1278_v31 = vpop.f32.mrb[5].mxu0  ;;  %842 = vrot.lane.b32.xlu0 %v807_v25, %s1871_s21  ;;  %816 = vrot.lane.b32.xlu1 %v806_v27, %s1870_s22 }
 0x213   : > { %v802_v32 = vpop.f32.mrb[6].mxu0 }
 0x214   : > { %v808_v33 = vpack.c.bf16 %v800_v30, %v800_v30  ;;  %v1279_v34 = vpop.f32.mrb[7].mxu0 }
 0x216   : > { %812 = vst.msk [vmem:[%s2331_s20] sm:$0xf] %vm809_vm2, %v808_v33  ;;  %837 = vrot.lane.b32.xlu1 %v806_v27, %s1871_s21  ;;  %832 = vrot.lane.b32.xlu0 %v808_v33, %s1870_s22 }
 0x21a   : > { %852 = vrot.lane.b32.xlu1 %v806_v27, %s1869_s26  ;;  %847 = vrot.lane.b32.xlu0 %v808_v33, %s1871_s21 }
 0x21e   : > { %862 = vrot.lane.b32.xlu0 %v808_v33, %s1869_s26 }
 0x280   : > { %v858_v35 = vpop.permute.xlu1 %857  ;;  %v825_v36 = vpop.permute.xlu0 %824 }
 0x281   : > { %1228 = vst.msk [vmem:[%s2321_s1 + $0xc] sm:$0xf] %vm809_vm2, %v858_v35  ;;  %1221 = vst.msk [vmem:[%s2321_s1 + $0x4] sm:$0xf] %vm809_vm2, %v825_v36 }
 0x284   : > { %v843_v37 = vpop.permute.xlu0 %842  ;;  %v817_v38 = vpop.permute.xlu1 %816 }
 0x285   : > { %1225 = vst.msk [vmem:[%s2321_s1 + $0x8] sm:$0xf] %vm809_vm2, %v843_v37  ;;  %1219 = vst.msk [vmem:[%s2326_s30 + $0x4] sm:$0xf] %vm809_vm2, %v817_v38 }
 0x286   : > { %1709 = shalt.err (!%p1706_p5)
}
 0x287   : > { %s1710_s23 = scalar_lea.hbm %s2349_s25, 256  ;;  %s1714_s12 = scalar_lea.hbm %s2580_s16, 512 }
 0x288   : > { %p1711_p8 = scmp.ne.s32.totalorder %s2349_s25, %s1710_s23  ;;  %p1715_p4 = scmp.lt.u32.totalorder %s2349_s25, %s2580_s16 }
 0x289   : > { %p1716_p7 = scmp.lt.u32.totalorder %s1714_s12, %s1710_s23  ;;  %p1718_p3 = scmp.lt.u32.totalorder %s1710_s23, %s2349_s25 }
 0x28a   : > { %p1712_p11 = pnand %p1711_p8, %p2581_p2 }
 0x28b   : > { %p1717_p6 = por %p1716_p7, %p1715_p4 }
 0x28c   : > { %p1713_p13 = pneg %p1712_p11 }
 0x28d   : > { %p1719_p12 = por %p1718_p3, %p1717_p6 }
 0x28f   : > { %p1720_p1 = pnand %p1719_p12, %p1713_p13 }
 0x291   : > { %1723 = shalt.err (!%p1720_p1)
}
 0x292   : > { %s1873_s22 = smov 64   ;;  %s1874_s21 = smov 4   ;;  %v838_v39 = vpop.permute.xlu1 %837  ;;  %v833_v40 = vpop.permute.xlu0 %832 }
 0x293   : > { %1311 = dma.vmem_to_hbm [thread:$0]  (%p2581_p2), %s2339_s13, 256, %s2349_s25, %s2357_s15, %s1873_s22, %s1873_s22, %s1874_s21  }
 0x294   : > { %s892_s24 = sshll.u32 %s2326_s30, 4  ;;  %1224 = vst.msk [vmem:[%s2326_s30 + $0x8] sm:$0xf] %vm809_vm2, %v838_v39  ;;  %1223 = vst.msk [vmem:[%s2331_s20 + $0x4] sm:$0xf] %vm809_vm2, %v833_v40  ;;  %s2582_s10 = sld [smem:[#allocation41_spill]]  ;;  %s2389_s24 = int_to_ptr.vmem [resolvable:$true] %s892_s24 }
 0x295   : > { %s926_s28 = sshll.u32 %s2331_s20, 4  ;;  %s868_s13 = scalar_lea.sflag [#allocation4], %s2280_s14  ;;  %s2431_s28 = int_to_ptr.vmem [resolvable:$true] %s926_s28 }
 0x296   : > { %v853_v41 = vpop.permute.xlu1 %852  ;;  %v848_v42 = vpop.permute.xlu0 %847  ;;  %s1724_s25 = scalar_lea.vmem %s2389_s24, 256  ;;  %s1875_s3 = smov [#allocation17]  }
 0x297   : > { %1227 = vst.msk [vmem:[%s2326_s30 + $0xc] sm:$0xf] %vm809_vm2, %v853_v41  ;;  %1226 = vst.msk [vmem:[%s2331_s20 + $0x8] sm:$0xf] %vm809_vm2, %v848_v42  ;;  %p1725_p9 = scmp.ne.s32.totalorder %s2389_s24, %s1724_s25  ;;  %s1728_s23 = sshll.u32 %s1875_s3, 4  ;;  %s1729_s23 = int_to_ptr.vmem [resolvable:$false] %s1728_s23 }
 0x298   : > { %s1730_s7 = scalar_lea.vmem %s1729_s23, 512  ;;  %p1731_p5 = scmp.lt.s32.totalorder %s2389_s24, %s1729_s23 }
 0x299   : > { %p1726_p10 = pnand %p1725_p9, %p2581_p2  ;;  %p1732_p8 = scmp.lt.s32.totalorder %s1730_s7, %s1724_s25 }
 0x29a   : > { %s2395_s5 = scalar_lea.hbm %s2582_s10, %s2337_s9 }
 0x29b   : > { %p1727_p0 = pneg %p1726_p10  ;;  %p1733_p11 = por %p1732_p8, %p1731_p5 }
 0x29d   : > { %p1734_p13 = pnand %p1733_p11, %p1727_p0 }
 0x29f   : > { %1737 = shalt.err (!%p1734_p13)
}
 0x2a0   : > { %s1738_s30 = scalar_lea.hbm %s2395_s5, 256  ;;  %s1742_s1 = scalar_lea.hbm %s2582_s10, 512 }
 0x2a1   : > { %p1739_p4 = scmp.ne.s32.totalorder %s2395_s5, %s1738_s30  ;;  %p1743_p3 = scmp.lt.u32.totalorder %s2395_s5, %s2582_s10 }
 0x2a2   : > { %p1744_p12 = scmp.lt.u32.totalorder %s1742_s1, %s1738_s30  ;;  %p1746_p9 = scmp.lt.u32.totalorder %s1738_s30, %s2395_s5 }
 0x2a3   : > { %p1740_p7 = pnand %p1739_p4, %p2581_p2 }
 0x2a4   : > { %p1745_p1 = por %p1744_p12, %p1743_p3 }
 0x2a5   : > { %p1741_p6 = pneg %p1740_p7 }
 0x2a6   : > { %p1747_p10 = por %p1746_p9, %p1745_p1 }
 0x2a8   : > { %p1748_p0 = pnand %p1747_p10, %p1741_p6 }
 0x2aa   : > { %1751 = shalt.err (!%p1748_p0)
}
 0x2ab   : > { %1310 = dma.vmem_to_hbm [thread:$0]  (%p2581_p2), %s2389_s24, 256, %s2395_s5, %s868_s13, %s1873_s22, %s1873_s22, %s1874_s21   ;;  %v863_v43 = vpop.permute.xlu0 %862 }
 0x2ac   : > { %s2583_s3 = sld [smem:[#allocation43_spill]]  ;;  %1229 = vst.msk [vmem:[%s2331_s20 + $0xc] sm:$0xf] %vm809_vm2, %v863_v43  ;;  %s1752_s14 = scalar_lea.vmem %s2431_s28, 256 }
 0x2ad   : > { %p1753_p5 = scmp.ne.s32.totalorder %s2431_s28, %s1752_s14  ;;  %s1876_s24 = smov [#allocation20]  }
 0x2ae   : > { %s1756_s5 = sshll.u32 %s1876_s24, 4  ;;  %s1757_s5 = int_to_ptr.vmem [resolvable:$false] %s1756_s5 }
 0x2af   : > { %p1754_p8 = pnand %p1753_p5, %p2581_p2  ;;  %s1758_s13 = scalar_lea.vmem %s1757_s5, 512 }
 0x2b0   : > { %p1759_p13 = scmp.lt.s32.totalorder %s2431_s28, %s1757_s5  ;;  %p1760_p4 = scmp.lt.s32.totalorder %s1758_s13, %s1752_s14 }
 0x2b1   : > { %p1755_p11 = pneg %p1754_p8 }
 0x2b2   : > { %s2437_s23 = scalar_lea.hbm %s2583_s3, %s2337_s9  ;;  %p1761_p7 = por %p1760_p4, %p1759_p13 }
 0x2b4   : > { %p1762_p6 = pnand %p1761_p7, %p1755_p11 }
 0x2b6   : > { %1765 = shalt.err (!%p1762_p6)
}
 0x2b7   : > { %s1766_s20 = scalar_lea.hbm %s2437_s23, 256  ;;  %s1770_s30 = scalar_lea.hbm %s2583_s3, 512 }
 0x2b8   : > { %p1767_p3 = scmp.ne.s32.totalorder %s2437_s23, %s1766_s20  ;;  %p1771_p9 = scmp.lt.u32.totalorder %s2437_s23, %s2583_s3 }
 0x2b9   : > { %p1772_p10 = scmp.lt.u32.totalorder %s1770_s30, %s1766_s20  ;;  %p1774_p5 = scmp.lt.u32.totalorder %s1766_s20, %s2437_s23 }
 0x2ba   : > { %p1768_p12 = pnand %p1767_p3, %p2581_p2 }
 0x2bb   : > { %p1773_p0 = por %p1772_p10, %p1771_p9 }
 0x2bc   : > { %p1769_p1 = pneg %p1768_p12 }
 0x2bd   : > { %p1775_p8 = por %p1774_p5, %p1773_p0 }
 0x2bf   : > { %p1776_p11 = pnand %p1775_p8, %p1769_p1 }
 0x2c1   : > { %1779 = shalt.err (!%p1776_p11)
}
 0x2c2   : > { %1312 = dma.vmem_to_hbm [thread:$0]  (%p2581_p2), %s2431_s28, 256, %s2437_s23, %s2357_s15, %s1873_s22, %s1873_s22, %s1874_s21  }
 0x2c3 PF: > { %s2584_s1 = sld [smem:[#allocation28_spill]]  ;;  %s2585_s26 = sld [smem:[#allocation36_spill]] }
 0x2c4   : > { %s2586_s17 = sld [smem:[#allocation31_spill]] }
 0x2c9   : > { %s941_s27 = sand.u32 1, %s2584_s1   ;;  %p2587_p13 = scmp.ne.s32.totalorder %s2585_s26, 0 }
 0x2ca   : > { %p2588_p4 = scmp.ge.s32.totalorder %s2586_s17, 2  ;;  %s942_s25 = scalar_lea.sflag [#allocation4], %s941_s27 }
 0x2cc   : > { %p1346_p7 = pnand %p2588_p4, %p2587_p13 }
 0x2ce   : > { %1825 = dma.done.wait (!%p1346_p7), %s942_s25, 256  }
 0x2cf   : > { %1827 = vsyncadd (!%p1346_p7), %s942_s25, 4294967040  ;;  %s2589_s29 = sadd.s32 4294967294, %s2586_s17  }
 0x2d0   : > { %s950_s14 = sand.u32 1, %s2589_s29  }
 0x2d1   : > { %s951_s24 = scalar_lea.sflag [#allocation19], %s950_s14 }
 0x2d2   : > { %1829 = dma.done.wait (!%p1346_p7), %s951_s24, 512  }
 0x2d3   : > { %1831 = vsyncadd (!%p1346_p7), %s951_s24, 4294966784  ;;  %s37_s22 = sadd.s32 1, %s2586_s17   ;;  %s2590_s15 = sld [smem:[#allocation35_spill]] }
 0x2d4   : > { %p34_p2 = scmp.ge.s32.totalorder %s37_s22, 4   ;;  %s2591_s20 = sld [smem:[#allocation30_spill]] }
 0x2d5   : > { %s2592_s21 = sld [smem:[#allocation33_spill]]  ;;  %s2593_s17 = smov %s1838_s18 }
 0x2d6   : > { %s2594_s18 = smov %s1842_s19  ;;  %36 = sbr.rel (!%p34_p2) target bundleno = 21 (0x15), region = 190 }
 0x2d9   : > { %s2595_s19 = smov %s2590_s15 }
 0x2dd   :  { %965 = vsyncpa [#allocation3], 1 }
 0x2de   :  { %967 = vsyncpa [#allocation3 + $0x1], 1 }
 0x2df   :  { %968 = vsyncpa [#allocation6], 1 }
 0x2e0   :  { %970 = vsyncpa [#allocation6 + $0x1], 1 }
 0x2e1   :  { %971 = vsyncpa [#allocation9], 1 }
 0x2e2   :  { %972 = vsyncpa [#allocation12], 1 }
 0x2e3   :  { %973 = vsyncpa [#allocation15], 1 }
 0x2e4   :  { %974 = vsyncpa [#allocation4], 1 }
 0x2e5   :  { %976 = vsyncpa [#allocation4 + $0x1], 1 }
 0x2e6   :  { %977 = vsyncpa [#allocation19], 1 }
 0x2e7   :  { %979 = vsyncpa [#allocation19 + $0x1], 1 }

</bundles_post_ra>
